<compile_context>
chip_gen: v5e
topology: v5e:2x2
jax: 0.10.0
libtpu: 0.0.40
codegen_flags: <defaults>
</compile_context>

<pallas_src>
import jax
import jax.numpy as jnp
from jax import lax
from jax.experimental import pallas as pl
from jax.experimental.pallas import tpu as pltpu

IN_FEATURES = 13
HIDDEN = 10
OUT_FEATURES = 1

DEFAULT_TILE_B = 32768                 # 32K rows/step: v7x-safe (2 x 16 MiB input buffers)
VMEM_LIMIT_BYTES = 56 * 1024 * 1024    # > default scoped limit, < v7x 64 MiB physical VMEM


def mlp_kernel(x_ref, w1t_ref, b1w2_ref, b2_ref, o_ref):
    # x_ref   : (TILE_B, IN_FEATURES) f32  natural (row-major) layout straight from HBM
    # w1t_ref : (HIDDEN, IN_FEATURES) f32  layer-1 weight (transposed), VMEM-resident
    # b1w2_ref: (HIDDEN, 2)           f32  col 0 = b1, col 1 = w2 (single tiny resident tile)
    # b2_ref  : (1, 1)                f32  scalar bias in SMEM
    # o_ref   : (OUT_FEATURES, TILE_B) f32 lane-dense output (batch on lanes)
    x = x_ref[...]
    w1t = w1t_ref[...]

    # Layer 1 on the MXU: contract the feature axis of both operands (A @ B^T form) so the
    # result is already lane-dense (HIDDEN, TILE_B) -- no wrapper transpose, no extra pass.
    h = lax.dot_general(
        w1t, x,
        dimension_numbers=(((1,), (1,)), ((), ())),
        preferred_element_type=jnp.float32,
        precision=lax.Precision.HIGHEST,
    )                                              # (HIDDEN, TILE_B)

    b1 = b1w2_ref[:, 0:1]                          # (HIDDEN, 1) broadcast over lanes
    w2 = b1w2_ref[:, 1:2]                          # (HIDDEN, 1)
    h = jnp.maximum(h + b1, 0.0)                   # bias + relu (f32 VPU; v5e has no bf16 VPU)

    # Layer 2 (10 -> 1): VPU multiply + sublane reduce (XLU).  Avoids a 2nd tiny MXU push/pop
    # and keeps the store full-lane (no masked vst.msk single-lane stores).
    y = jnp.sum(w2 * h, axis=0, keepdims=True)     # (1, TILE_B)
    o_ref[...] = y + b2_ref[0, 0]


def nonlinear_model(x, w1, b1, w2, b2, *, tile_b=DEFAULT_TILE_B):
    """x: (B, 13) f32; w1: (13, 10); b1: (1, 10); w2: (10, 1); b2: (1, 1). Returns (B, 1) f32."""
    B = x.shape[0]
    x = x.astype(jnp.float32)

    # Small batches: one full-array block (no (8,128) constraint for full-dim blocks).
    # Large batches: 128-multiple batch tile, pipelined over a 1-D grid.
    if B <= tile_b:
        tile_b = B
    grid = (pl.cdiv(B, tile_b),)

    w1t = w1.T.astype(jnp.float32)                                        # (HIDDEN, IN)
    b1w2 = jnp.concatenate(
        [b1.reshape(HIDDEN, 1), w2.reshape(HIDDEN, 1)], axis=1
    ).astype(jnp.float32)                                                 # (HIDDEN, 2)
    b2s = jnp.asarray(b2, jnp.float32).reshape(1, 1)                      # (1, 1) -> SMEM

    yT = pl.pallas_call(
        mlp_kernel,
        out_shape=jax.ShapeDtypeStruct((OUT_FEATURES, B), jnp.float32),
        grid=grid,
        in_specs=[
            # Batch-tiled, double-buffered input stream in its natural HBM layout.
            pl.BlockSpec((tile_b, IN_FEATURES), lambda i: (i, 0)),
            # Tiny weights/biases: full blocks, constant index -> stay resident in VMEM.
            pl.BlockSpec((HIDDEN, IN_FEATURES), lambda i: (0, 0)),
            pl.BlockSpec((HIDDEN, 2), lambda i: (0, 0)),
            # Scalar bias via SMEM (no (8,128)-padded VMEM tile / DMA for 4 bytes).
            pl.BlockSpec((1, 1), lambda i: (0, 0),
                         memory_space=pltpu.MemorySpace.SMEM),
        ],
        out_specs=pl.BlockSpec((OUT_FEATURES, tile_b), lambda i: (0, i)),
        compiler_params=pltpu.CompilerParams(
            dimension_semantics=("parallel",),     # shard batch tiles across v7x's 2 TCs
            vmem_limit_bytes=VMEM_LIMIT_BYTES,     # allow the 32K-row tile (fits v7x 64 MiB)
        ),
    )(x, w1t, b1w2, b2s)

    # (1, B) -> (B, 1): same memory order, just a cheap reshape of the tiny output.
    return yT.reshape(B, OUT_FEATURES)


def init_params(key):
    # Deterministic synthetic init mimicking PyTorch's U(-1/sqrt(fan_in), 1/sqrt(fan_in)).
    k1, k2, k3, k4 = jax.random.split(key, 4)
    bound1 = 1.0 / jnp.sqrt(IN_FEATURES)
    bound2 = 1.0 / jnp.sqrt(HIDDEN)
    w1 = jax.random.uniform(k1, (IN_FEATURES, HIDDEN), jnp.float32, -bound1, bound1)
    b1 = jax.random.uniform(k2, (1, HIDDEN), jnp.float32, -bound1, bound1)
    w2 = jax.random.uniform(k3, (HIDDEN, OUT_FEATURES), jnp.float32, -bound2, bound2)
    b2 = jax.random.uniform(k4, (1, OUT_FEATURES), jnp.float32, -bound2, bound2)
    return w1, b1, w2, b2


if __name__ == "__main__":
    key = jax.random.PRNGKey(0)
    kp, kx = jax.random.split(key)
    w1, b1, w2, b2 = init_params(kp)

    def ref_fn(x):
        h = jnp.maximum(jnp.dot(x, w1, precision="highest") + b1, 0.0)
        return jnp.dot(h, w2, precision="highest") + b2

    # (batch, tile_b override): small full-block case + a multi-step pipelined grid case.
    cases = [(8, None), (768, 256)]
    for batch, tb in cases:
        kx, sub = jax.random.split(kx)
        x = jax.random.normal(sub, (batch, IN_FEATURES), jnp.float32)
        kwargs = {} if tb is None else {"tile_b": tb}

        out = jax.block_until_ready(nonlinear_model(x, w1, b1, w2, b2, **kwargs))
        ref = ref_fn(x)

        assert out.shape == (batch, OUT_FEATURES)
        max_diff = float(jnp.max(jnp.abs(out - ref)))
        assert jnp.allclose(out, ref, atol=1e-3, rtol=1e-3), (
            f"mismatch for batch={batch}: max |diff| = {max_diff}")

    print("KERNEL_OK")
</pallas_src>

<mosaic_0001>
module attributes {stable_mosaic.version = 11 : i64} {
  func.func @mlp_kernel(%arg0: i32, %arg1: memref<8x13xf32, #tpu.memory_space<vmem>>, %arg2: memref<10x13xf32, #tpu.memory_space<vmem>>, %arg3: memref<10x2xf32, #tpu.memory_space<vmem>>, %arg4: memref<1x1xf32, #tpu.memory_space<smem>>, %arg5: memref<1x8xf32, #tpu.memory_space<vmem>>) attributes {dimension_semantics = [#tpu.dimension_semantics<parallel>], iteration_bounds = array<i64: 1>, scalar_prefetch = 0 : i64, scratch_operands = 0 : i64, tpu.core_type = #tpu.core_type<tc>, window_params = [{transform_indices = @transform_0, window_bounds = array<i64: 8, 13>}, {pipeline_mode = #tpu.pipeline_mode<synchronous>, transform_indices = @transform_1, window_bounds = array<i64: 10, 13>}, {pipeline_mode = #tpu.pipeline_mode<synchronous>, transform_indices = @transform_2, window_bounds = array<i64: 10, 2>}, {transform_indices = @transform_3, window_bounds = array<i64: 1, 1>}, {transform_indices = @transform_4, window_bounds = array<i64: 1, 8>}]} {
    %c0 = arith.constant 0 : index
    %c0_0 = arith.constant 0 : index
    %0 = vector.load %arg1[%c0, %c0_0] : memref<8x13xf32, #tpu.memory_space<vmem>>, vector<8x13xf32>
    %c0_1 = arith.constant 0 : index
    %c0_2 = arith.constant 0 : index
    %1 = vector.load %arg2[%c0_1, %c0_2] : memref<10x13xf32, #tpu.memory_space<vmem>>, vector<10x13xf32>
    %cst = arith.constant dense<0.000000e+00> : vector<10x8xf32>
    %2 = tpu.matmul %1, %0, %cst {dimension_numbers = #tpu.dot_dimension_numbers<[1], [1], [0], [0], [0, 0, 1, 0], [], []>, precision = #tpu.contract_precision<fp32>} : vector<10x13xf32>, vector<8x13xf32>, vector<10x8xf32> -> vector<10x8xf32>
    %c0_3 = arith.constant 0 : index
    %c0_4 = arith.constant 0 : index
    %3 = vector.load %arg3[%c0_3, %c0_4] : memref<10x2xf32, #tpu.memory_space<vmem>>, vector<10x1xf32>
    %c0_5 = arith.constant 0 : index
    %c1 = arith.constant 1 : index
    %4 = vector.load %arg3[%c0_5, %c1] : memref<10x2xf32, #tpu.memory_space<vmem>>, vector<10x1xf32>
    %5 = vector.broadcast %3 : vector<10x1xf32> to vector<10x8xf32>
    %6 = arith.addf %2, %5 : vector<10x8xf32>
    %cst_6 = arith.constant 0.000000e+00 : f32
    %7 = vector.broadcast %cst_6 : f32 to vector<10x8xf32>
    %8 = arith.maximumf %6, %7 : vector<10x8xf32>
    %9 = vector.broadcast %4 : vector<10x1xf32> to vector<10x8xf32>
    %10 = arith.mulf %9, %8 : vector<10x8xf32>
    %cst_7 = arith.constant dense<0.000000e+00> : vector<8xf32>
    %11 = vector.multi_reduction <add>, %10, %cst_7 [0] : vector<10x8xf32> to vector<8xf32>
    %12 = vector.shape_cast %11 : vector<8xf32> to vector<1x8xf32>
    %c0_8 = arith.constant 0 : index
    %c0_9 = arith.constant 0 : index
    %13 = memref.load %arg4[%c0_8, %c0_9] : memref<1x1xf32, #tpu.memory_space<smem>>
    %14 = vector.broadcast %13 : f32 to vector<1x8xf32>
    %15 = arith.addf %12, %14 : vector<1x8xf32>
    %c0_10 = arith.constant 0 : index
    %c0_11 = arith.constant 0 : index
    %16 = vector.load %arg5[%c0_10, %c0_11] : memref<1x8xf32, #tpu.memory_space<vmem>>, vector<1x8xf32>
    tpu.vector_store %arg5[%c0_10, %c0_11], %15 {strides = array<i32>} : memref<1x8xf32, #tpu.memory_space<vmem>>, vector<1x8xf32>,
    return
  }
  func.func @transform_0(%arg0: i32) -> (i32, i32) {
    %c0_i32 = arith.constant 0 : i32
    %c0_i32_0 = arith.constant 0 : i32
    return %arg0, %c0_i32 : i32, i32
  }
  func.func @transform_1(%arg0: i32) -> (i32, i32) {
    %c0_i32 = arith.constant 0 : i32
    %c0_i32_0 = arith.constant 0 : i32
    %c0_i32_1 = arith.constant 0 : i32
    return %c0_i32, %c0_i32_0 : i32, i32
  }
  func.func @transform_2(%arg0: i32) -> (i32, i32) {
    %c0_i32 = arith.constant 0 : i32
    %c0_i32_0 = arith.constant 0 : i32
    %c0_i32_1 = arith.constant 0 : i32
    return %c0_i32, %c0_i32_0 : i32, i32
  }
  func.func @transform_3(%arg0: i32) -> (i32, i32) {
    %c0_i32 = arith.constant 0 : i32
    %c0_i32_0 = arith.constant 0 : i32
    %c0_i32_1 = arith.constant 0 : i32
    return %c0_i32, %c0_i32_0 : i32, i32
  }
  func.func @transform_4(%arg0: i32) -> (i32, i32) {
    %c0_i32 = arith.constant 0 : i32
    %c0_i32_0 = arith.constant 0 : i32
    return %c0_i32, %arg0 : i32, i32
  }
}

</mosaic_0001>

<bundles_post_ra>
// kernel: tpu_custom_call.1
= control target key start
LH: loop header
LB: loop body
LE: loop exit
PB: predicated region body
PF: predicated region fallthrough
CT: control target
= control target key end

     0   :  { %10 = vsyncpa [#allocation4], 0  ;;  %s391_s0 = inlined_call_operand.hbm [shape: f32[8,13], index: 0, kind: input, shape index: {}]   ;;  %s392_s1 = inlined_call_operand.vmem [shape: f32[10,13], index: 1, kind: input, shape index: {}]   ;;  %s393_s2 = inlined_call_operand.vmem [shape: f32[10,2], index: 2, kind: input, shape index: {}]   ;;  %s394_s3 = inlined_call_operand.<no memory space> [shape: f32[1,1], index: 3, kind: input, shape index: {}]   ;;  %s395_s4 = inlined_call_operand.hbm [shape: f32[1,8], index: 4, kind: output, shape index: {}]  }
   0x1   :  { %11 = vsyncpa [#allocation5], 0  ;;  %s17_s17 = sshll.u32 %s391_s0, 4  ;;  %s341_s18 = smov [#allocation3]   ;;  %s18_s17 = int_to_ptr.hbm [resolvable:$true] %s17_s17 }
   0x2   :  { %s19_s19 = sshll.u32 %s341_s18, 4  ;;  %s20_s19 = int_to_ptr.vmem [resolvable:$true] %s19_s19 }
   0x3   :  { %22 = dma.hbm_to_vmem [thread:$0]  %s18_s17, 128, %s20_s19, [#allocation4]  }
   0x4   :  { %337 = dma.done.wait [#allocation4], 128  }
   0x5   :  { %338 = vsyncadd [#allocation4], 4294967168  ;;  %v342_v0 = vmov 0   ;;  %vm48_vm0 = vcmask 105472   ;;  %v33_v1 = vld [vmem:[#allocation3] sm:$0xff]  ;;  %v343_v4 = vmov 1  }
   0x6   :  { %286 = vset.pattern.permute.xlu0 %v342_v0  ;;  %v35_v2 = vld [vmem:[%s392_s1 + $0x8] sm:$0x3]  ;;  %v34_v3 = vld [vmem:[%s392_s1] sm:$0xff]  ;;  %287 = vset.pattern.permute.xlu1 %v343_v4  ;;  %v56_v5 = vsel %vm48_vm0, %v33_v1, 0  ;;  %vm247_vm1 = vcmask 64512   ;;  %vm249_vm2 = vcmask 58368   ;;  %v259_v1 = vstv %s394_s3 }
   0x7   :  { %v53_v6 = vsel %vm48_vm0, %v35_v2, 0  ;;  %v50_v7 = vsel %vm48_vm0, %v34_v3, 0  ;;  %v36_v8 = vld [vmem:[%s393_s2] sm:$0xff]  ;;  %v73_v9 = vand.u32 4294901760, %v56_v5  ;;  %v37_v18 = vld [vmem:[%s393_s2 + $0x8] sm:$0x3] }
   0x8   :  { %v83_v10 = vand.u32 4294901760, %v53_v6  ;;  %v75_v11 = vand.u32 4294901760, %v50_v7  ;;  %40 = vperm.xlu0 %286, %v36_v8   ;;  %238 = vperm.xlu1 %287, %v36_v8   ;;  %s344_s27 = smov [#allocation6]   ;;  %s270_s5 = sshll.u32 %s395_s4, 4  ;;  %vm261_vm3 = vcmask 57344   ;;  %s271_s5 = int_to_ptr.hbm [resolvable:$true] %s270_s5 }
   0x9   :  { %280 = vmatpush.xpose.msra.mxu2 %v73_v9  ;;  %v108_v13 = vsub.f32 %v56_v5, %v73_v9  ;;  %74 = vmatpush.xpose.msra.mxu0 %v73_v9  ;;  %s268_s28 = sshll.u32 %s344_s27, 4  ;;  %s269_s28 = int_to_ptr.vmem [resolvable:$true] %s268_s28 }
   0xa   :  { %v84_v12 = vsub.f32 %v53_v6, %v83_v10  ;;  %v76_v14 = vsub.f32 %v50_v7, %v75_v11 }
   0xb   :  { %v109_v16 = vand.u32 4294901760, %v108_v13 }
   0xc   :  { %v85_v15 = vand.u32 4294901760, %v84_v12  ;;  %v77_v17 = vand.u32 4294901760, %v76_v14 }
   0xd   :  { %139 = vmatpush.xpose.msrb.mxu2 %v108_v13  ;;  %v110_v20 = vsub.f32 %v108_v13, %v109_v16  ;;  %199 = vmatpush.xpose.msrb.mxu0 %v109_v16 }
   0xe   :  { %v86_v19 = vsub.f32 %v84_v12, %v85_v15  ;;  %v78_v21 = vsub.f32 %v76_v14, %v77_v17 }
   0xf   :  { %v111_v23 = vand.u32 4294901760, %v110_v20 }
  0x10   :  { %v87_v22 = vand.u32 4294901760, %v86_v19  ;;  %v79_v24 = vand.u32 4294901760, %v78_v21  ;;  %45 = vperm.xlu0 %286, %v37_v18   ;;  %242 = vperm.xlu1 %287, %v37_v18  }
  0x11   :  { %281 = vmatpush.xpose.msra.mxu3 %v111_v23  ;;  %112 = vmatpush.xpose.msra.mxu1 %v111_v23 }
  0x12   :  { %88 = vmatmul.f32.vlgmr.msra.gmra.mxu2 %v87_v22  ;;  %80 = vmatmul.f32.vlgmr.msra.gmra.mxu0 %v79_v24 }
  0x14   :  { %118 = vmatmul.f32.vlgmr.msra.gmra.mxu3 %v83_v10  ;;  %114 = vmatmul.f32.vlgmr.msra.gmra.mxu1 %v75_v11 }
  0x15   :  { %167 = vmatpush.xpose.msrb.mxu3 %v73_v9  ;;  %225 = vmatpush.xpose.msrb.mxu1 %v73_v9 }
  0x18   :  { %288 = vset.pattern.permute.xlu0 %v343_v4 }
  0x1a   :  { %142 = vmatmul.f32.vlgmr.msrb.gmra.mxu2 %v76_v14  ;;  %201 = vmatmul.f32.vlgmr.msrb.gmra.mxu0 %v75_v11 }
  0x1c   :  { %171 = vmatmul.f32.vlgmr.msrb.gmra.mxu3 %v77_v17  ;;  %227 = vmatmul.f32.vlgmr.msrb.gmra.mxu1 %v75_v11 }
  0x22   :  { %147 = vmatmul.f32.gmra.mxu2 %v84_v12  ;;  %205 = vmatmul.f32.gmra.mxu0 %v83_v10 }
  0x24   :  { %177 = vmatmul.f32.gmra.mxu3 %v85_v15  ;;  %231 = vmatmul.f32.gmra.mxu1 %v83_v10 }
  0x7a   :  { %v41_v25 = vpop.permute.xlu0 %40  ;;  %v239_v43 = vpop.permute.xlu1 %238 }
  0x82   :  { %v46_v32 = vpop.permute.xlu0 %45  ;;  %v243_v55 = vpop.permute.xlu1 %242 }
  0x8f   :  { %v81_v26 = vpop.f32.mrf.mxu0 }
  0x90   :  { %v82_v28 = vadd.f32 %v81_v26, %v41_v25 }
  0x91   :  { %v115_v29 = vpop.f32.mrf.mxu1 }
  0x92   :  { %v116_v31 = vadd.f32 %v115_v29, %v82_v28 }
  0x95   :  { %v89_v27 = vpop.f32.mrf.mxu2 }
  0x96   :  { %v90_v36 = vadd.f32 %v89_v27, %v46_v32 }
  0x97   :  { %v119_v30 = vpop.f32.mrf.mxu3  ;;  %v202_v35 = vpop.f32.mrf.mxu0 }
  0x98   :  { %v120_v41 = vadd.f32 %v119_v30, %v90_v36 }
  0x99   :  { %v228_v38 = vpop.f32.mrf.mxu1 }
  0x9d   :  { %v143_v33 = vpop.f32.mrf.mxu2 }
  0x9e   :  { %v144_v34 = vadd.f32 %v143_v33, %v116_v31 }
  0x9f   :  { %v172_v37 = vpop.f32.mrf.mxu3  ;;  %v206_v47 = vpop.f32.mrf.mxu0 }
  0xa0   :  { %v173_v39 = vadd.f32 %v172_v37, %v144_v34 }
  0xa1   :  { %v232_v49 = vpop.f32.mrf.mxu1 }
  0xa2   :  { %v203_v40 = vadd.f32 %v202_v35, %v173_v39 }
  0xa4   :  { %v229_v45 = vadd.f32 %v228_v38, %v203_v40 }
  0xa5   :  { %v148_v42 = vpop.f32.mrf.mxu2 }
  0xa6   :  { %v149_v44 = vadd.f32 %v148_v42, %v120_v41  ;;  %v235_v50 = vmax.f32 %v229_v45, 0.0 }
  0xa7   :  { %v178_v46 = vpop.f32.mrf.mxu3 }
  0xa8   :  { %v179_v48 = vadd.f32 %v178_v46, %v149_v44  ;;  %v245_v53 = vmul.f32 %v239_v43, %v235_v50 }
  0xaa   :  { %v207_v51 = vadd.f32 %v206_v47, %v179_v48  ;;  %v248_v57 = vsel %vm247_vm1, %v245_v53, 0.0 }
  0xac   :  { %v233_v52 = vadd.f32 %v232_v49, %v207_v51 }
  0xae   :  { %v236_v54 = vmax.f32 %v233_v52, 0.0 }
  0xb0   :  { %v246_v56 = vmul.f32 %v243_v55, %v236_v54 }
  0xb2   :  { %v250_v58 = vsel %vm249_vm2, %v246_v56, 0.0 }
  0xb3   :  { %v251_v59 = vadd.f32 %v250_v58, %v248_v57 }
  0xb5   :  { %v252_v60 = vrot.slane %v251_v59, 4 }
  0xb7   :  { %v253_v61 = vadd.f32 %v252_v60, %v251_v59 }
  0xb9   :  { %v254_v62 = vrot.slane %v253_v61, 2 }
  0xbb   :  { %v255_v63 = vadd.f32 %v254_v62, %v253_v61 }
  0xbd   :  { %v256_v0 = vrot.slane %v255_v63, 1 }
  0xbf   :  { %v257_v2 = vadd.f32 %v256_v0, %v255_v63 }
  0xc1   :  { %v260_v3 = vadd.f32 %v259_v1, %v257_v2 }
  0xc3   :  { %262 = vst.msk [vmem:[#allocation6] sm:$0x1] %vm261_vm3, %v260_v3 }
  0xc4   :  { %273 = dma.vmem_to_hbm [thread:$0]  %s269_s28, 16, %s271_s5, [#allocation5]  }
  0xc5   :  { %339 = dma.done.wait [#allocation5], 16  }
  0xc6   :  { %340 = vsyncadd [#allocation5], 4294967280 }
  0xc7   :  { %278 = vsyncpa [#allocation4], 1 }
  0xc8   :  { %279 = vsyncpa [#allocation5], 1 }

</bundles_post_ra>
